<compile_context>
chip_gen: v7x
topology: tpu7x:2x2x1
jax: 0.10.0
libtpu: 0.0.40
codegen_flags: <defaults>
</compile_context>

<pallas_src>
import functools

import jax
import jax.numpy as jnp
from jax.experimental import pallas as pl
from jax.experimental.pallas import tpu as pltpu


def _vmem_limit_bytes():
    """Per-generation VMEM budget: ~3/4 of physical capacity, capped at 100 MiB."""
    cap = 64 * 1024 * 1024          # conservative default (v7x physical VMEM)
    try:
        info = pltpu.get_tpu_info()
        for attr in ("vmem_capacity_bytes", "vmem_size_bytes"):
            v = getattr(info, attr, None)
            if v:
                cap = int(v)
                break
    except Exception:
        pass
    return min((cap * 3) // 4, 100 * 1024 * 1024)


def _conv_stats_kernel(x_ref, w_ref, stats_ref, acc_ref, *, Bn, K, Lc):
    """Pass 1: folded-K valid Conv1d for Bn samples + BN sum / sum-sq partials.

    The (Cout, 2) accumulator lives in a VMEM scratch private to this core and
    is flushed to the per-core stats output once, at the last inner step.
    """
    @pl.when(pl.program_id(1) == 0)
    def _init():
        acc_ref[...] = jnp.zeros_like(acc_ref)

    x = x_ref[...]                              # (Bn, Cin, L)  bf16
    w = w_ref[...]                              # (Cout, K*Cin) bf16
    cout = w.shape[0]
    s = jnp.zeros((cout, 1), jnp.float32)
    ss = jnp.zeros((cout, 1), jnp.float32)
    for n in range(Bn):                         # static unroll (Bn is small)
        xn = x[n]                               # (Cin, L)
        # im2col patch matrix: row = k*Cin + cin, matching w_flat's layout.
        # One MXU matmul with contraction Cin*K instead of K tiny dots.
        p = jnp.concatenate([xn[:, k:k + Lc] for k in range(K)], axis=0)
        z = jnp.dot(w, p, preferred_element_type=jnp.float32)   # (Cout, Lc) f32
        # Conv bias intentionally omitted: it cancels under training-mode BN.
        s = s + jnp.sum(z, axis=1, keepdims=True)
        ss = ss + jnp.sum(z * z, axis=1, keepdims=True)
    acc_ref[:, 0:1] += s
    acc_ref[:, 1:2] += ss

    @pl.when(pl.program_id(1) == pl.num_programs(1) - 1)
    def _flush():
        stats_ref[0] = acc_ref[...]             # single writeback per core


def _conv_bn_relu_pool_kernel(x_ref, w_ref, scale_ref, shift_ref, o_ref,
                              *, Bn, K, Lc, Lp, div):
    """Pass 2: recompute conv, apply folded BN scale/shift, ReLU, MaxPool1d.

    Output is packed (Cout, Bn*Lp): the Bn samples are stacked along the lane
    axis so the store is as lane-dense as the block allows (wrapper unpacks).
    """
    x = x_ref[...]                              # (Bn, Cin, L)  bf16
    w = w_ref[...]                              # (Cout, K*Cin) bf16
    scale = scale_ref[...]                      # (Cout, 1) f32
    shift = shift_ref[...]                      # (Cout, 1) f32
    cout = w.shape[0]
    pooled = []
    for n in range(Bn):                         # static unroll (Bn is small)
        xn = x[n]                               # (Cin, L)
        p = jnp.concatenate([xn[:, k:k + Lc] for k in range(K)], axis=0)
        z = jnp.dot(w, p, preferred_element_type=jnp.float32)   # (Cout, Lc) f32
        y = jnp.maximum(z * scale + shift, 0.0)                 # BN fold + ReLU
        # MaxPool1d(kernel=div, stride=div, remainder dropped): reshape + one
        # reduction over the minormost axis.
        pooled.append(jnp.max(y[:, :Lp * div].reshape(cout, Lp, div), axis=-1))
    o_ref[0] = jnp.concatenate(pooled, axis=1).astype(o_ref.dtype)  # (Cout, Bn*Lp)


def brain_conv(x, w, b, gamma, beta, *, kernel_size, div=0, eps=1e-5,
               block_n=None):
    """Pallas implementation of BrainConv.forward.

    x: (N, C_in, L) float32.  Returns (N, C_out, (L - K + 1) // div).
    """
    if div <= 0:
        div = kernel_size - 1
    N, Cin, L = x.shape
    Cout, _, K = w.shape
    assert K == kernel_size
    Lc = L - K + 1
    Lp = Lc // div
    if Lp < 1:
        raise ValueError("pooled length is 0: need L - kernel_size + 1 >= div")

    vmem_limit = _vmem_limit_bytes()

    # Samples per grid step.  Bigger blocks amortize per-step overhead and make
    # HBM DMAs large; capped at 16 because the per-sample conv/pool loop is
    # statically unrolled inside the kernel.
    if block_n is None:
        per_sample = (2 * Cin * L * 2          # x tile (double-buffered, bf16)
                      + K * Cin * Lc * 2       # in-kernel patch matrix (bf16)
                      + 2 * Cout * Lc * 4      # conv / BN working set (f32)
                      + 2 * Cout * Lp * 4)     # packed output (double-buffered)
        block_n = max(1, min(N, 16, (vmem_limit // 4) // max(per_sample, 1)))
    Bn = int(block_n)

    n_blocks = pl.cdiv(N, Bn)
    n_cores = 2 if n_blocks >= 2 else 1        # megacore split for pass-1 stats
    blocks_per_core = pl.cdiv(n_blocks, n_cores)
    nb_total = n_cores * blocks_per_core
    N_pad = nb_total * Bn

    # bf16 MXU operands; all accumulation and BN math stays f32.  x is read by
    # BOTH passes (recompute strategy), so the one-off wrapper cast pays off.
    xb = x.astype(jnp.bfloat16)
    if N_pad != N:
        # Zero padding is stats-safe: padded samples convolve to exactly 0
        # (no conv bias), contribute nothing to the batch sums, and their
        # pass-2 outputs are sliced off below.
        xb = jnp.pad(xb, ((0, N_pad - N), (0, 0), (0, 0)))
    # Folded weights: w_flat[o, k*Cin + c] = w[o, c, k] (matches the in-kernel
    # im2col row order).
    w_flat = jnp.transpose(w, (0, 2, 1)).reshape(Cout, K * Cin).astype(jnp.bfloat16)
    # Conv bias is a mathematical no-op under training-mode BatchNorm; it must
    # be reinstated if eval-mode running statistics are ever used.
    del b

    count = N * Lc          # real (un-padded) elements per channel

    # ---- pass 1: conv -> per-core BN sum / sum-of-squares partials ----------
    flops1 = 2 * N_pad * Lc * Cout * Cin * K + 3 * N_pad * Cout * Lc
    bytes1 = N_pad * Cin * L * 2 + Cout * K * Cin * 2 + n_cores * Cout * 2 * 4
    stats = pl.pallas_call(
        functools.partial(_conv_stats_kernel, Bn=Bn, K=K, Lc=Lc),
        grid=(n_cores, blocks_per_core),
        in_specs=[
            pl.BlockSpec((Bn, Cin, L),
                         lambda c, i: (c * blocks_per_core + i, 0, 0)),
            pl.BlockSpec((Cout, K * Cin), lambda c, i: (0, 0)),
        ],
        out_specs=pl.BlockSpec((1, Cout, 2), lambda c, i: (c, 0, 0)),
        out_shape=jax.ShapeDtypeStruct((n_cores, Cout, 2), jnp.float32),
        scratch_shapes=[pltpu.VMEM((Cout, 2), jnp.float32)],
        compiler_params=pltpu.CompilerParams(
            # Outer axis shards across v7x's two TensorCores (each core owns a
            # private stats partial); the inner reduction axis stays sequential.
            dimension_semantics=("parallel", "arbitrary"),
            vmem_limit_bytes=vmem_limit),
        cost_estimate=pl.CostEstimate(flops=flops1, transcendentals=0,
                                      bytes_accessed=bytes1),
    )(xb, w_flat)

    # ---- fold batch stats into per-channel scale/shift (tiny, plain JAX) ----
    total = jnp.sum(stats, axis=0)                              # (Cout, 2)
    mean = total[:, 0:1] / count
    # One-pass variance (E[x^2] - mean^2) in f32: fine at these magnitudes,
    # may lose precision for very large batches / activations.
    var = jnp.maximum(total[:, 1:2] / count - mean * mean, 0.0)
    scale = gamma.reshape(Cout, 1).astype(jnp.float32) * jax.lax.rsqrt(var + eps)
    shift = beta.reshape(Cout, 1).astype(jnp.float32) - mean * scale

    # ---- pass 2: recompute conv -> BN fold -> ReLU -> MaxPool (fully parallel)
    flops2 = 2 * N_pad * Lc * Cout * Cin * K + 3 * N_pad * Cout * Lc
    bytes2 = (N_pad * Cin * L * 2 + Cout * K * Cin * 2 + 2 * Cout * 4
              + N_pad * Cout * Lp * 4)
    out_packed = pl.pallas_call(
        functools.partial(_conv_bn_relu_pool_kernel,
                          Bn=Bn, K=K, Lc=Lc, Lp=Lp, div=div),
        grid=(nb_total,),
        in_specs=[
            pl.BlockSpec((Bn, Cin, L), lambda i: (i, 0, 0)),
            pl.BlockSpec((Cout, K * Cin), lambda i: (0, 0)),
            pl.BlockSpec((Cout, 1), lambda i: (0, 0)),
            pl.BlockSpec((Cout, 1), lambda i: (0, 0)),
        ],
        out_specs=pl.BlockSpec((1, Cout, Bn * Lp), lambda i: (i, 0, 0)),
        out_shape=jax.ShapeDtypeStruct((nb_total, Cout, Bn * Lp), x.dtype),
        compiler_params=pltpu.CompilerParams(
            dimension_semantics=("parallel",),
            vmem_limit_bytes=vmem_limit),
        cost_estimate=pl.CostEstimate(flops=flops2, transcendentals=0,
                                      bytes_accessed=bytes2),
    )(xb, w_flat, scale, shift)

    # Unpack the lane-packed (Cout, Bn*Lp) block layout back to (N, Cout, Lp).
    out = out_packed.reshape(nb_total, Cout, Bn, Lp)
    out = jnp.transpose(out, (0, 2, 1, 3)).reshape(N_pad, Cout, Lp)
    return out[:N]


def _reference(x, w, b, gamma, beta, *, kernel_size, div, eps=1e-5):
    """Pure-JAX reference of the same forward pass (bias included)."""
    K = kernel_size
    Lc = x.shape[-1] - K + 1
    acc = sum(jnp.einsum('oi,nil->nol', w[:, :, k], x[:, :, k:k + Lc])
              for k in range(K)) + b[None, :, None]
    mean = jnp.mean(acc, axis=(0, 2), keepdims=True)
    var = jnp.mean((acc - mean) ** 2, axis=(0, 2), keepdims=True)
    y = (acc - mean) / jnp.sqrt(var + eps)
    y = y * gamma[None, :, None] + beta[None, :, None]
    y = jnp.maximum(y, 0.0)
    Lp = Lc // div
    y = y[:, :, :Lp * div].reshape(y.shape[0], y.shape[1], Lp, div)
    return jnp.max(y, axis=-1)


if __name__ == "__main__":
    # Conv1d(ch_in=4, ch_out=8, K=5), div = K - 1 = 4, input length 16
    # -> conv length 12 -> pooled length 3.
    N, CH_IN, CH_OUT, L, K = 2, 4, 8, 16, 5
    DIV = K - 1

    key = jax.random.PRNGKey(0)
    kx, kw, kb, kg, kbt, kx2 = jax.random.split(key, 6)
    x = jax.random.normal(kx, (N, CH_IN, L), dtype=jnp.float32)
    w = jax.random.normal(kw, (CH_OUT, CH_IN, K), dtype=jnp.float32) * 0.1
    b = jax.random.normal(kb, (CH_OUT,), dtype=jnp.float32) * 0.1
    gamma = 1.0 + 0.1 * jax.random.normal(kg, (CH_OUT,), dtype=jnp.float32)
    beta = 0.1 * jax.random.normal(kbt, (CH_OUT,), dtype=jnp.float32)

    out = brain_conv(x, w, b, gamma, beta, kernel_size=K, div=0)
    out = jax.block_until_ready(out)
    assert out.shape == (N, CH_OUT, (L - K + 1) // DIV), out.shape

    # Reference mirrors the kernel's bf16 MXU operand rounding (accumulation is
    # f32 in both).  The reference keeps the conv bias; the kernel drops it
    # (it cancels exactly under training-mode BatchNorm).
    x_r = x.astype(jnp.bfloat16).astype(jnp.float32)
    w_r = w.astype(jnp.bfloat16).astype(jnp.float32)
    ref = _reference(x_r, w_r, b, gamma, beta, kernel_size=K, div=DIV)
    err = float(jnp.max(jnp.abs(out - ref)))
    assert jnp.allclose(out, ref, atol=2e-3, rtol=2e-3), f"max abs diff {err:e}"

    # Second config: odd batch with a forced small block size exercises the
    # padding, multi-block grid, and per-core (megacore) stats-partial paths.
    N2, L2 = 5, 20
    x2 = jax.random.normal(kx2, (N2, CH_IN, L2), dtype=jnp.float32)
    out2 = jax.block_until_ready(
        brain_conv(x2, w, b, gamma, beta, kernel_size=K, div=0, block_n=2))
    ref2 = _reference(x2.astype(jnp.bfloat16).astype(jnp.float32), w_r, b,
                      gamma, beta, kernel_size=K, div=DIV)
    assert out2.shape == ref2.shape, (out2.shape, ref2.shape)
    err2 = float(jnp.max(jnp.abs(out2 - ref2)))
    assert jnp.allclose(out2, ref2, atol=2e-3, rtol=2e-3), f"max abs diff {err2:e}"

    print("KERNEL_OK")
</pallas_src>

<mosaic_0001>
module attributes {stable_mosaic.version = 11 : i64} {
  func.func @_conv_stats_kernel(%arg0: i32, %arg1: i32, %arg2: memref<2x4x16xbf16, #tpu.memory_space<vmem>>, %arg3: memref<8x20xbf16, #tpu.memory_space<vmem>>, %arg4: memref<1x8x2xf32, #tpu.memory_space<vmem>>, %arg5: memref<8x2xf32, #tpu.memory_space<vmem>>) attributes {dimension_semantics = [#tpu.dimension_semantics<parallel>, #tpu.dimension_semantics<arbitrary>], iteration_bounds = array<i64: 1, 1>, scalar_prefetch = 0 : i64, scratch_operands = 1 : i64, tpu.core_type = #tpu.core_type<tc>, window_params = [{transform_indices = @transform_0, window_bounds = array<i64: 2, 4, 16>}, {pipeline_mode = #tpu.pipeline_mode<synchronous>, transform_indices = @transform_1, window_bounds = array<i64: 8, 20>}, {transform_indices = @transform_2, window_bounds = array<i64: 1, 8, 2>}]} {
    %c0_i32 = arith.constant 0 : i32
    %0 = arith.cmpi eq, %arg1, %c0_i32 : i32
    %1 = arith.extui %0 : i1 to i32
    %c0_i32_0 = arith.constant 0 : i32
    %2 = arith.cmpi ne, %1, %c0_i32_0 : i32
    scf.if %2 {
      %cst_21 = arith.constant 0.000000e+00 : f32
      %48 = vector.broadcast %cst_21 : f32 to vector<8x2xf32>
      %c0_22 = arith.constant 0 : index
      %c0_23 = arith.constant 0 : index
      %49 = vector.load %arg5[%c0_22, %c0_23] : memref<8x2xf32, #tpu.memory_space<vmem>>, vector<8x2xf32>
      tpu.vector_store %arg5[%c0_22, %c0_23], %48 {strides = array<i32>} : memref<8x2xf32, #tpu.memory_space<vmem>>, vector<8x2xf32>,
    } else {
    }
    %c0 = arith.constant 0 : index
    %c0_1 = arith.constant 0 : index
    %c0_2 = arith.constant 0 : index
    %3 = vector.load %arg2[%c0, %c0_1, %c0_2] : memref<2x4x16xbf16, #tpu.memory_space<vmem>>, vector<2x4x16xbf16>
    %c0_3 = arith.constant 0 : index
    %c0_4 = arith.constant 0 : index
    %4 = vector.load %arg3[%c0_3, %c0_4] : memref<8x20xbf16, #tpu.memory_space<vmem>>, vector<8x20xbf16>
    %cst = arith.constant 0.000000e+00 : f32
    %5 = vector.broadcast %cst : f32 to vector<8x1xf32>
    %cst_5 = arith.constant 0.000000e+00 : f32
    %6 = vector.broadcast %cst_5 : f32 to vector<8x1xf32>
    %7 = vector.extract_strided_slice %3 {offsets = [0, 0, 0], sizes = [1, 4, 16], strides = [1, 1, 1]} : vector<2x4x16xbf16> to vector<1x4x16xbf16>
    %8 = vector.shape_cast %7 : vector<1x4x16xbf16> to vector<4x16xbf16>
    %9 = vector.extract_strided_slice %8 {offsets = [0, 0], sizes = [4, 12], strides = [1, 1]} : vector<4x16xbf16> to vector<4x12xbf16>
    %10 = vector.extract_strided_slice %8 {offsets = [0, 1], sizes = [4, 12], strides = [1, 1]} : vector<4x16xbf16> to vector<4x12xbf16>
    %11 = vector.extract_strided_slice %8 {offsets = [0, 2], sizes = [4, 12], strides = [1, 1]} : vector<4x16xbf16> to vector<4x12xbf16>
    %12 = vector.extract_strided_slice %8 {offsets = [0, 3], sizes = [4, 12], strides = [1, 1]} : vector<4x16xbf16> to vector<4x12xbf16>
    %13 = vector.extract_strided_slice %8 {offsets = [0, 4], sizes = [4, 12], strides = [1, 1]} : vector<4x16xbf16> to vector<4x12xbf16>
    %14 = tpu.concatenate %9, %10, %11, %12, %13 in 0 : vector<4x12xbf16>, vector<4x12xbf16>, vector<4x12xbf16>, vector<4x12xbf16>, vector<4x12xbf16> -> vector<20x12xbf16>
    %cst_6 = arith.constant dense<0.000000e+00> : vector<8x12xf32>
    %15 = tpu.matmul %4, %14, %cst_6 {dimension_numbers = #tpu.dot_dimension_numbers<[1], [0], [0], [1], [0, 0, 1, 1], [], []>} : vector<8x20xbf16>, vector<20x12xbf16>, vector<8x12xf32> -> vector<8x12xf32>
    %cst_7 = arith.constant dense<0.000000e+00> : vector<8xf32>
    %16 = vector.multi_reduction <add>, %15, %cst_7 [1] : vector<8x12xf32> to vector<8xf32>
    %17 = vector.shape_cast %16 : vector<8xf32> to vector<8x1xf32>
    %18 = arith.addf %5, %17 : vector<8x1xf32>
    %19 = arith.mulf %15, %15 : vector<8x12xf32>
    %cst_8 = arith.constant dense<0.000000e+00> : vector<8xf32>
    %20 = vector.multi_reduction <add>, %19, %cst_8 [1] : vector<8x12xf32> to vector<8xf32>
    %21 = vector.shape_cast %20 : vector<8xf32> to vector<8x1xf32>
    %22 = arith.addf %6, %21 : vector<8x1xf32>
    %23 = vector.extract_strided_slice %3 {offsets = [1, 0, 0], sizes = [1, 4, 16], strides = [1, 1, 1]} : vector<2x4x16xbf16> to vector<1x4x16xbf16>
    %24 = vector.shape_cast %23 : vector<1x4x16xbf16> to vector<4x16xbf16>
    %25 = vector.extract_strided_slice %24 {offsets = [0, 0], sizes = [4, 12], strides = [1, 1]} : vector<4x16xbf16> to vector<4x12xbf16>
    %26 = vector.extract_strided_slice %24 {offsets = [0, 1], sizes = [4, 12], strides = [1, 1]} : vector<4x16xbf16> to vector<4x12xbf16>
    %27 = vector.extract_strided_slice %24 {offsets = [0, 2], sizes = [4, 12], strides = [1, 1]} : vector<4x16xbf16> to vector<4x12xbf16>
    %28 = vector.extract_strided_slice %24 {offsets = [0, 3], sizes = [4, 12], strides = [1, 1]} : vector<4x16xbf16> to vector<4x12xbf16>
    %29 = vector.extract_strided_slice %24 {offsets = [0, 4], sizes = [4, 12], strides = [1, 1]} : vector<4x16xbf16> to vector<4x12xbf16>
    %30 = tpu.concatenate %25, %26, %27, %28, %29 in 0 : vector<4x12xbf16>, vector<4x12xbf16>, vector<4x12xbf16>, vector<4x12xbf16>, vector<4x12xbf16> -> vector<20x12xbf16>
    %cst_9 = arith.constant dense<0.000000e+00> : vector<8x12xf32>
    %31 = tpu.matmul %4, %30, %cst_9 {dimension_numbers = #tpu.dot_dimension_numbers<[1], [0], [0], [1], [0, 0, 1, 1], [], []>} : vector<8x20xbf16>, vector<20x12xbf16>, vector<8x12xf32> -> vector<8x12xf32>
    %cst_10 = arith.constant dense<0.000000e+00> : vector<8xf32>
    %32 = vector.multi_reduction <add>, %31, %cst_10 [1] : vector<8x12xf32> to vector<8xf32>
    %33 = vector.shape_cast %32 : vector<8xf32> to vector<8x1xf32>
    %34 = arith.addf %18, %33 : vector<8x1xf32>
    %35 = arith.mulf %31, %31 : vector<8x12xf32>
    %cst_11 = arith.constant dense<0.000000e+00> : vector<8xf32>
    %36 = vector.multi_reduction <add>, %35, %cst_11 [1] : vector<8x12xf32> to vector<8xf32>
    %37 = vector.shape_cast %36 : vector<8xf32> to vector<8x1xf32>
    %38 = arith.addf %22, %37 : vector<8x1xf32>
    %c0_12 = arith.constant 0 : index
    %c0_13 = arith.constant 0 : index
    %39 = vector.load %arg5[%c0_12, %c0_13] : memref<8x2xf32, #tpu.memory_space<vmem>>, vector<8x1xf32>
    %40 = arith.addf %39, %34 : vector<8x1xf32>
    %c0_14 = arith.constant 0 : index
    %c0_15 = arith.constant 0 : index
    %41 = vector.load %arg5[%c0_14, %c0_15] : memref<8x2xf32, #tpu.memory_space<vmem>>, vector<8x1xf32>
    tpu.vector_store %arg5[%c0_14, %c0_15], %40 {strides = array<i32>} : memref<8x2xf32, #tpu.memory_space<vmem>>, vector<8x1xf32>,
    %c0_16 = arith.constant 0 : index
    %c1 = arith.constant 1 : index
    %42 = vector.load %arg5[%c0_16, %c1] : memref<8x2xf32, #tpu.memory_space<vmem>>, vector<8x1xf32>
    %43 = arith.addf %42, %38 : vector<8x1xf32>
    %c0_17 = arith.constant 0 : index
    %c1_18 = arith.constant 1 : index
    %44 = vector.load %arg5[%c0_17, %c1_18] : memref<8x2xf32, #tpu.memory_space<vmem>>, vector<8x1xf32>
    tpu.vector_store %arg5[%c0_17, %c1_18], %43 {strides = array<i32>} : memref<8x2xf32, #tpu.memory_space<vmem>>, vector<8x1xf32>,
    %c0_i32_19 = arith.constant 0 : i32
    %45 = arith.cmpi eq, %arg1, %c0_i32_19 : i32
    %46 = arith.extui %45 : i1 to i32
    %c0_i32_20 = arith.constant 0 : i32
    %47 = arith.cmpi ne, %46, %c0_i32_20 : i32
    scf.if %47 {
      %c0_21 = arith.constant 0 : index
      %c0_22 = arith.constant 0 : index
      %48 = vector.load %arg5[%c0_21, %c0_22] : memref<8x2xf32, #tpu.memory_space<vmem>>, vector<8x2xf32>
      %c0_23 = arith.constant 0 : index
      %c0_24 = arith.constant 0 : index
      %c0_25 = arith.constant 0 : index
      %49 = vector.load %arg4[%c0_23, %c0_24, %c0_25] : memref<1x8x2xf32, #tpu.memory_space<vmem>>, vector<1x8x2xf32>
      %50 = vector.shape_cast %49 : vector<1x8x2xf32> to vector<8x2xf32>
      %51 = vector.shape_cast %48 : vector<8x2xf32> to vector<1x8x2xf32>
      tpu.vector_store %arg4[%c0_23, %c0_24, %c0_25], %51 {strides = array<i32>} : memref<1x8x2xf32, #tpu.memory_space<vmem>>, vector<1x8x2xf32>,
    } else {
    }
    return
  }
  func.func @transform_0(%arg0: i32, %arg1: i32) -> (i32, i32, i32) {
    %c1_i32 = arith.constant 1 : i32
    %0 = arith.muli %arg0, %c1_i32 : i32
    %1 = arith.addi %0, %arg1 : i32
    %c0_i32 = arith.constant 0 : i32
    %c0_i32_0 = arith.constant 0 : i32
    %c0_i32_1 = arith.constant 0 : i32
    return %1, %c0_i32, %c0_i32_0 : i32, i32, i32
  }
  func.func @transform_1(%arg0: i32, %arg1: i32) -> (i32, i32) {
    %c0_i32 = arith.constant 0 : i32
    %c0_i32_0 = arith.constant 0 : i32
    %c0_i32_1 = arith.constant 0 : i32
    return %c0_i32, %c0_i32_0 : i32, i32
  }
  func.func @transform_2(%arg0: i32, %arg1: i32) -> (i32, i32, i32) {
    %c0_i32 = arith.constant 0 : i32
    %c0_i32_0 = arith.constant 0 : i32
    %c0_i32_1 = arith.constant 0 : i32
    return %arg0, %c0_i32, %c0_i32_0 : i32, i32, i32
  }
}

</mosaic_0001>

<bundles_post_ra>
// kernel: tpu_custom_call.1
= control target key start
LH: loop header
LB: loop body
LE: loop exit
PB: predicated region body
PF: predicated region fallthrough
CT: control target
= control target key end

     0   :  { %7 = vsyncpa [#allocation4], 0  ;;  %s408_s0 = inlined_call_operand.hbm [shape: bf16[2,4,16], index: 0, kind: input, shape index: {}]   ;;  %s409_s1 = inlined_call_operand.hbm [shape: bf16[8,20], index: 1, kind: input, shape index: {}]   ;;  %s410_s2 = inlined_call_operand.vmem [shape: f32[1,8,2], index: 2, kind: output, shape index: {}]  }
   0x1   :  { %8 = vsyncpa [#allocation6], 0  ;;  %s338_s9 = smov [#allocation3]   ;;  %s290_s13 = scalar_lea.hbm %s408_s0, 64 }
   0x2   :  { %s18_s10 = sshll.u32 %s338_s9, 4  ;;  %p291_p0 = scmp.ne.s32.totalorder %s408_s0, %s290_s13  ;;  %s19_s10 = int_to_ptr.vmem [resolvable:$true] %s18_s10 }
   0x3   :  { %p294_p1 = scmp.lt.u32.totalorder %s290_s13, %s408_s0 }
   0x5   :  { %p296_p2 = pnand %p294_p1, %p291_p0 }
   0x7   :  { %299 = shalt.err (!%p296_p2)
}
   0x8   :  { %s300_s18 = scalar_lea.vmem %s19_s10, 64  ;;  %p305_p4 = scmp.lt.s32.totalorder %s19_s10, %s19_s10 }
   0x9   :  { %p301_p3 = scmp.ne.s32.totalorder %s19_s10, %s300_s18  ;;  %p306_p5 = scmp.lt.s32.totalorder %s300_s18, %s300_s18 }
   0xb   :  { %p307_p6 = por %p306_p5, %p305_p4 }
   0xd   :  { %p308_p7 = pnand %p307_p6, %p301_p3 }
   0xf   :  { %311 = shalt.err (!%p308_p7)
}
  0x10   :  { %s339_s19 = smov 32   ;;  %s340_s20 = smov 2  }
  0x11   :  { %24 = dma.hbm_to_vmem [thread:$0]  %s408_s0, 64, %s19_s10, [#allocation4], %s339_s19, %s339_s19, %s340_s20  }
  0x12   :  { %s341_s23 = smov [#allocation5]   ;;  %s312_s27 = scalar_lea.hbm %s409_s1, 64 }
  0x13   :  { %s31_s24 = sshll.u32 %s341_s23, 4  ;;  %p313_p8 = scmp.ne.s32.totalorder %s409_s1, %s312_s27  ;;  %s32_s24 = int_to_ptr.vmem [resolvable:$true] %s31_s24 }
  0x14   :  { %p316_p9 = scmp.lt.u32.totalorder %s312_s27, %s409_s1 }
  0x16   :  { %p318_p10 = pnand %p316_p9, %p313_p8 }
  0x18   :  { %321 = shalt.err (!%p318_p10)
}
  0x19   :  { %s322_s4 = scalar_lea.vmem %s32_s24, 64  ;;  %p327_p12 = scmp.lt.s32.totalorder %s32_s24, %s32_s24 }
  0x1a   :  { %p323_p11 = scmp.ne.s32.totalorder %s32_s24, %s322_s4  ;;  %p328_p13 = scmp.lt.s32.totalorder %s322_s4, %s322_s4 }
  0x1c   :  { %p329_p0 = por %p328_p13, %p327_p12 }
  0x1e   :  { %p330_p1 = pnand %p329_p0, %p323_p11 }
  0x20   :  { %333 = shalt.err (!%p330_p1)
}
  0x21   :  { %34 = dma.hbm_to_vmem [thread:$0]  %s409_s1, 64, %s32_s24, [#allocation6]  }
  0x22   :  { %334 = dma.done.wait [#allocation4], 64  }
  0x23   :  { %335 = vsyncadd [#allocation4], 4294967232 }
  0x24   :  { %336 = dma.done.wait [#allocation6], 64  }
  0x25   :  { %337 = vsyncadd [#allocation6], 4294967232  ;;  %v58_v0 = vlaneseq  ;;  %v342_v1 = vmov 1983009808   ;;  %v50_v6 = vld [vmem:[#allocation3] sm:$0x3] }
  0x26   :  { %v56_v2 = vunpack.c.l.s4 %v342_v1  ;;  %v51_v7 = vld [vmem:[#allocation3 + $0x2] sm:$0x3]  ;;  %v343_v8 = vmov 0.0   ;;  %v54_v10 = vcombine.low %v50_v6, %v50_v6  ;;  %s344_s1 = smov 126   ;;  %s345_s6 = smov 127   ;;  %vm346_vm0 = vmmov 0  }
  0x27   :  { %v59_v3 = vshrl.u32 %v58_v0, 7  ;;  %261 = vmatprep.subr.bf16.mxu0 %v343_v8  ;;  %269 = vmatprep.subr.bf16.mxu1 %v343_v8  ;;  %v148_v12 = vcombine.low %v51_v7, %v51_v7  ;;  %s347_s7 = smov 125   ;;  %s348_s8 = smov 124   ;;  %vm79_vm1 = vcmask 1041408   ;;  %vm83_vm2 = vcmask 1043456  }
  0x28   :  { %v57_v4 = vunpack.c.0.s8 %v56_v2  ;;  %265 = vmatprep.mubr.msk.bf16.mxu0 %vm346_vm0, %v343_v8  ;;  %273 = vmatprep.mubr.msk.bf16.mxu1 %vm346_vm0, %v343_v8  ;;  %vm86_vm3 = vcmask 1045504   ;;  %v52_v35 = vld [vmem:[#allocation5] sm:$0xf]  ;;  %vm90_vm4 = vcmask 162816   ;;  %vm137_vm5 = vcmask 97280  }
  0x29   :  { %vm48_vm6 = vcmask 15360   ;;  %vm235_vm7 = vcmask 7168   ;;  %vm239_vm8 = vcmask 15368  }
  0x2a   :  { %v60_v5 = vsub.s32 %v57_v4, %v59_v3  ;;  %49 = vst.msk [vmem:[#allocation2] sm:$0xff] %vm48_vm6, %v343_v8 }
  0x2c   :  { %v68_v9 = vrot.slane %v50_v6, %v60_v5  ;;  %v162_v11 = vrot.slane %v51_v7, %v60_v5  ;;  %v61_v14 = vrot.slane %v54_v10, %v60_v5  ;;  %v155_v16 = vrot.slane %v148_v12, %v60_v5 }
  0x2e   :  { %v71_v13 = vcombine.low %v68_v9, %v68_v9  ;;  %69 = vrot.lane.b32.xlu0 %v61_v14, %s345_s6  ;;  %v165_v15 = vcombine.low %v162_v11, %v162_v11  ;;  %v74_v17 = vcombine.low %v61_v14, %v61_v14  ;;  %v168_v18 = vcombine.low %v155_v16, %v155_v16 }
  0x30   :  { %72 = vrot.lane.b32.xlu1 %v71_v13, %s344_s1 }
  0x31   :  { %v233_v52 = vld [vmem:[#allocation2] sm:$0xff] }
  0x32   :  { %163 = vrot.lane.b32.xlu0 %v155_v16, %s345_s6 }
  0x34   :  { %166 = vrot.lane.b32.xlu1 %v165_v15, %s344_s1 }
  0x36   :  { %75 = vrot.lane.b32.xlu0 %v74_v17, %s347_s7 }
  0x38   :  { %169 = vrot.lane.b32.xlu1 %v168_v18, %s347_s7 }
  0x3a   :  { %77 = vrot.lane.b32.xlu0 %v68_v9, %s348_s8 }
  0x3c   :  { %171 = vrot.lane.b32.xlu1 %v162_v11, %s348_s8 }
  0xa0   :  { %v70_v20 = vpop.permute.xlu0 %69 }
  0xa1   :  { %v82_v23 = vsel %vm79_vm1, %v50_v6, %v70_v20 }
  0xa2   :  { %v73_v19 = vpop.permute.xlu1 %72 }
  0xa3   :  { %v85_v27 = vsel %vm83_vm2, %v82_v23, %v73_v19 }
  0xa4   :  { %v164_v22 = vpop.permute.xlu0 %163 }
  0xa5   :  { %v175_v24 = vsel %vm79_vm1, %v51_v7, %v164_v22 }
  0xa6   :  { %v167_v21 = vpop.permute.xlu1 %166 }
  0xa7   :  { %v177_v28 = vsel %vm83_vm2, %v175_v24, %v167_v21 }
  0xa8   :  { %v76_v26 = vpop.permute.xlu0 %75 }
  0xa9   :  { %v88_v29 = vsel %vm86_vm3, %v85_v27, %v76_v26 }
  0xaa   :  { %v170_v25 = vpop.permute.xlu1 %169  ;;  %262 = vmatpush3.bf16.msra.mxu0 %v88_v29 }
  0xab   :  { %v179_v30 = vsel %vm86_vm3, %v177_v28, %v170_v25  ;;  %263 = vmatprep.subr.bf16.mxu0 %v343_v8 }
  0xac   :  { %270 = vmatpush3.bf16.msra.mxu1 %v179_v30  ;;  %v78_v32 = vpop.permute.xlu0 %77 }
  0xad   :  { %271 = vmatprep.subr.bf16.mxu1 %v343_v8  ;;  %v95_v34 = vsel %vm79_vm1, %v78_v32, 0 }
  0xae   :  { %v172_v31 = vpop.permute.xlu1 %171  ;;  %264 = vmatpush3.bf16.msra.mxu0 %v95_v34 }
  0xaf   :  { %v182_v33 = vsel %vm79_vm1, %v172_v31, 0 }
  0xb0   :  { %272 = vmatpush3.bf16.msra.mxu1 %v182_v33 }
  0xb1   :  { %266 = vmatmul.mubr.msk.bf16.vlgmr.msra.gmra.mrb[0].mxu0 %vm90_vm4, %v52_v35 }
  0xb3   :  { %274 = vmatmul.mubr.msk.bf16.vlgmr.msra.gmra.mrb[0].mxu1 %vm90_vm4, %v52_v35 }
 0x184   :  { %v131_v36 = vpop.f32.mrb[0].mxu0 }
 0x185   :  { %v142_v38 = vmul.f32 %v131_v36, %v131_v36  ;;  %v267_v39 = vpop.f32.mrb[1].mxu0  ;;  %v138_v42 = vsel %vm137_vm5, %v131_v36, 0.0 }
 0x186   :  { %v218_v37 = vpop.f32.mrb[0].mxu1  ;;  %139 = vadd.xlane.f32.xlu0 %v138_v42  ;;  %v134_v44 = vpop.f32.mrb[2].mxu0 }
 0x187   :  { %v275_v40 = vpop.f32.mrb[1].mxu1  ;;  %v224_v41 = vsel %vm137_vm5, %v218_v37, 0.0  ;;  %v268_v45 = vpop.f32.mrb[3].mxu0  ;;  %v228_v47 = vmul.f32 %v218_v37, %v218_v37  ;;  %v143_v48 = vsel %vm137_vm5, %v142_v38, 0.0 }
 0x188   :  { %225 = vadd.xlane.f32.xlu1 %v224_v41  ;;  %v221_v43 = vpop.f32.mrb[2].mxu1 }
 0x189   :  { %v276_v46 = vpop.f32.mrb[3].mxu1  ;;  %v229_v49 = vsel %vm137_vm5, %v228_v47, 0.0 }
 0x18a   :  { %144 = vadd.xlane.f32.xlu0 %v143_v48 }
 0x18e   :  { %230 = vadd.xlane.f32.xlu0 %v229_v49 }
 0x213   :  { %v140_v51 = vpop.xlane.xlu0 %139 }
 0x215   :  { %v226_v50 = vpop.xlane.xlu1 %225 }
 0x216   :  { %v227_v53 = vadd.f32 %v226_v50, %v140_v51 }
 0x217   :  { %v145_v55 = vpop.xlane.xlu0 %144 }
 0x218   :  { %v234_v54 = vadd.f32 %v233_v52, %v227_v53 }
 0x21a   :  { %236 = vst.msk [vmem:[#allocation2] sm:$0xff] %vm235_vm7, %v234_v54 }
 0x21b   :  { %v231_v56 = vpop.xlane.xlu0 %230 }
 0x21c   :  { %v232_v57 = vadd.f32 %v231_v56, %v145_v55 }
 0x221   :  { %v237_v58 = vld [vmem:[#allocation2] sm:$0xff] }
 0x222   :  { %v238_v59 = vadd.f32 %v237_v58, %v232_v57 }
 0x224   :  { %240 = vst.msk [vmem:[#allocation2] sm:$0xff] %vm239_vm8, %v238_v59 }
 0x22b   :  { %v244_v60 = vld [vmem:[#allocation2] sm:$0xff] }
 0x22c   :  { %246 = vst.msk [vmem:[%s410_s2] sm:$0xff] %vm48_vm6, %v244_v60 }
 0x22d   :  { %251 = vsyncpa [#allocation4], 1 }
 0x22e   :  { %252 = vsyncpa [#allocation6], 1 }

</bundles_post_ra>
